<compile_context>
chip_gen: v5e
topology: v5e:2x2
jax: 0.10.0
libtpu: 0.0.40
codegen_flags: <defaults>
</compile_context>

<pallas_src>
import functools

import jax
import jax.numpy as jnp
from jax import lax
from jax.experimental import pallas as pl
from jax.experimental.pallas import tpu as pltpu

_NEG_FILL = -1e30  # bias fill for padded fc1 columns: never selected by top-k


def _round_up(v, m):
    return (v + m - 1) // m * m


def sdm_kernel(x_ref, w1t_ref, b1_ref, w2t_ref, b2_ref, out_ref, *, top_k):
    # ---- input nonlinearity + address normalization -------------------------
    x = x_ref[...].astype(jnp.float32)
    x = jnp.maximum(x, 0.0)                                     # nn.ReLU()
    inv_norm = lax.rsqrt(jnp.sum(x * x, axis=1, keepdims=True))  # EUP rsqrt
    x = x * inv_norm        # x / torch.norm(x, dim=1) (no eps, as in the torch code)

    # ---- fc1: (tb, Dp) @ (Dp, Np) + b1 (bf16 MXU, f32 accumulate) ------------
    h = jnp.dot(x.astype(jnp.bfloat16), w1t_ref[...],
                preferred_element_type=jnp.float32)
    h = h + b1_ref[...]                     # (1, Np) broadcast; padded cols = -1e30

    # ---- Top-K activation ----------------------------------------------------
    # k unrolled masked-max passes with a running kept-count: the threshold is
    # exactly the k-th largest value even under ties; keep every h >= thr.
    neg_inf = jnp.float32(-jnp.inf)
    k_f = jnp.float32(top_k)

    def body(_, carry):
        masked, thr, cnt = carry
        cur_max = jnp.max(masked, axis=1, keepdims=True)        # XLU reduce
        hit = masked >= cur_max
        hits = jnp.sum(hit.astype(jnp.float32), axis=1, keepdims=True)
        need = cnt < k_f
        thr = jnp.where(need, cur_max, thr)
        cnt = cnt + hits
        masked = jnp.where(hit, neg_inf, masked)
        return masked, thr, cnt

    rows = h.shape[0]
    init = (h,
            jnp.full((rows, 1), jnp.inf, dtype=jnp.float32),
            jnp.zeros((rows, 1), dtype=jnp.float32))
    _, thr, _ = lax.fori_loop(0, top_k, body, init, unroll=True)
    h_topk = jnp.where(h >= thr, h, 0.0)

    # ---- purkinje layer: (tb, Np) @ (Np, Op) + b2 ----------------------------
    out = jnp.dot(h_topk.astype(jnp.bfloat16), w2t_ref[...],
                  preferred_element_type=jnp.float32)
    out = out + b2_ref[...]
    out_ref[...] = out.astype(out_ref.dtype)


def sdm_forward(x, w1, b1, w2, b2, *, top_k, batch_tile=None):
    """x: (B, D_in); w1: (N, D_in); b1: (N,); w2: (O, N); b2: (O,)."""
    B, D_in = x.shape
    N = w1.shape[0]
    O = w2.shape[0]
    assert top_k <= N

    # Lane-dense padding of all feature axes (multiples of 128).
    Dp = _round_up(D_in, 128)
    Np = _round_up(N, 128)
    Op = _round_up(O, 128)

    # Batch tile: fill the MXU for large batches, round small batches to sublane 8.
    if batch_tile is None:
        if B >= 512:
            tb = 256
        elif B >= 128:
            tb = 128
        else:
            tb = _round_up(B, 8)
    else:
        tb = batch_tile
    B_pad = _round_up(B, tb)

    # Glue: pad, pre-transpose, cast weights to bf16 (MXU dtype, half the DMA).
    x_p = jnp.zeros((B_pad, Dp), x.dtype).at[:B, :D_in].set(x)
    if B_pad > B:
        x_p = x_p.at[B:, 0].set(1.0)   # keep padded rows finite through rsqrt

    w1t = jnp.zeros((Dp, Np), jnp.bfloat16).at[:D_in, :N].set(
        jnp.transpose(w1).astype(jnp.bfloat16))
    w2t = jnp.zeros((Np, Op), jnp.bfloat16).at[:N, :O].set(
        jnp.transpose(w2).astype(jnp.bfloat16))
    b1r = jnp.full((1, Np), _NEG_FILL, jnp.float32).at[0, :N].set(
        b1.astype(jnp.float32))
    b2r = jnp.zeros((1, Op), jnp.float32).at[0, :O].set(b2.astype(jnp.float32))

    # Explicit VMEM budget (bytes): weights + biases + double-buffered I/O +
    # in-kernel f32 activation temps, with 2x headroom. Floor 32 MiB, cap 64 MiB
    # so the same wrapper stays legal on v7x (64 MiB physical VMEM per core).
    need = (2 * (Dp * Np + Np * Op) * 2            # bf16 weights (+double buffer)
            + 2 * (Np + Op) * 4                    # biases
            + 2 * tb * (Dp + Op) * 4               # double-buffered x/out blocks
            + 4 * tb * Np * 4)                     # h / masked / h_topk f32 temps
    vmem_limit = int(min(max(2 * need, 32 << 20), 64 << 20))

    kernel = functools.partial(sdm_kernel, top_k=top_k)

    out = pl.pallas_call(
        kernel,
        out_shape=jax.ShapeDtypeStruct((B_pad, Op), x.dtype),
        grid_spec=pltpu.PrefetchScalarGridSpec(
            num_scalar_prefetch=0,
            grid=(B_pad // tb,),
            in_specs=[
                pl.BlockSpec((tb, Dp), lambda i: (i, 0)),
                pl.BlockSpec((Dp, Np), lambda i: (0, 0)),
                pl.BlockSpec((1, Np), lambda i: (0, 0)),
                pl.BlockSpec((Np, Op), lambda i: (0, 0)),
                pl.BlockSpec((1, Op), lambda i: (0, 0)),
            ],
            out_specs=pl.BlockSpec((tb, Op), lambda i: (i, 0)),
        ),
        compiler_params=pltpu.CompilerParams(
            dimension_semantics=("parallel",),
            vmem_limit_bytes=vmem_limit),
    )(x_p, w1t, b1r, w2t, b2r)

    # TODO(synk): for very large nneurons (Np weight blocks no longer fitting
    # v7x's 64 MiB VMEM), add an "arbitrary" grid axis tiling Np with a two-pass
    # top-k threshold; unnecessary at these sizes.
    return out[:B, :O]


def sdm_reference(x, w1, b1, w2, b2, *, top_k):
    """Pure-JAX reference mirroring the kernel's bf16-matmul numerics."""
    x = jnp.maximum(x, 0.0)
    x = x * lax.rsqrt(jnp.sum(x * x, axis=1, keepdims=True))
    h = jnp.dot(x.astype(jnp.bfloat16), w1.T.astype(jnp.bfloat16),
                preferred_element_type=jnp.float32) + b1
    kth = lax.top_k(h, top_k)[0][:, -1:]
    h = jnp.where(h >= kth, h, 0.0)
    return jnp.dot(h.astype(jnp.bfloat16), w2.T.astype(jnp.bfloat16),
                   preferred_element_type=jnp.float32) + b2


if __name__ == "__main__":
    # Small shapes consistent with the module: already-flattened input.
    B, D_IN, NNEURONS, OUT, K = 8, 32, 64, 16, 8

    key = jax.random.PRNGKey(0)
    kx, kw1, kb1, kw2, kb2 = jax.random.split(key, 5)

    x = jax.random.normal(kx, (B, D_IN), dtype=jnp.float32)
    # Deterministic "nn.Linear"-like parameter init (synthetic, not a checkpoint).
    w1 = jax.random.normal(kw1, (NNEURONS, D_IN), dtype=jnp.float32) * (1.0 / jnp.sqrt(D_IN))
    b1 = jax.random.normal(kb1, (NNEURONS,), dtype=jnp.float32) * 0.01
    w2 = jax.random.normal(kw2, (OUT, NNEURONS), dtype=jnp.float32) * (1.0 / jnp.sqrt(NNEURONS))
    b2 = jax.random.normal(kb2, (OUT,), dtype=jnp.float32) * 0.01

    out = sdm_forward(x, w1, b1, w2, b2, top_k=K)
    out = jax.block_until_ready(out)

    ref = sdm_reference(x, w1, b1, w2, b2, top_k=K)
    assert out.shape == (B, OUT)
    assert jnp.allclose(out, ref, atol=2e-3, rtol=2e-3), \
        float(jnp.max(jnp.abs(out - ref)))

    # TODO(synk): training-only bookkeeping (log_neuron_activations_fn, wandb
    # logging, granule pruning, output_model_data dict) has no kernel equivalent.
    print("KERNEL_OK")
</pallas_src>

<mosaic_0001>
module attributes {stable_mosaic.version = 11 : i64} {
  func.func @sdm_kernel(%arg0: i32, %arg1: memref<8x128xf32, #tpu.memory_space<vmem>>, %arg2: memref<128x128xbf16, #tpu.memory_space<vmem>>, %arg3: memref<1x128xf32, #tpu.memory_space<vmem>>, %arg4: memref<128x128xbf16, #tpu.memory_space<vmem>>, %arg5: memref<1x128xf32, #tpu.memory_space<vmem>>, %arg6: memref<8x128xf32, #tpu.memory_space<vmem>>) attributes {dimension_semantics = [#tpu.dimension_semantics<parallel>], iteration_bounds = array<i64: 1>, scalar_prefetch = 0 : i64, scratch_operands = 0 : i64, tpu.core_type = #tpu.core_type<tc>, window_params = [{transform_indices = @transform_0, window_bounds = array<i64: 8, 128>}, {pipeline_mode = #tpu.pipeline_mode<synchronous>, transform_indices = @transform_1, window_bounds = array<i64: 128, 128>}, {pipeline_mode = #tpu.pipeline_mode<synchronous>, transform_indices = @transform_2, window_bounds = array<i64: 1, 128>}, {pipeline_mode = #tpu.pipeline_mode<synchronous>, transform_indices = @transform_3, window_bounds = array<i64: 128, 128>}, {pipeline_mode = #tpu.pipeline_mode<synchronous>, transform_indices = @transform_4, window_bounds = array<i64: 1, 128>}, {transform_indices = @transform_5, window_bounds = array<i64: 8, 128>}]} {
    %c0 = arith.constant 0 : index
    %c0_0 = arith.constant 0 : index
    %0 = vector.load %arg1[%c0, %c0_0] : memref<8x128xf32, #tpu.memory_space<vmem>>, vector<8x128xf32>
    %cst = arith.constant 0.000000e+00 : f32
    %1 = vector.broadcast %cst : f32 to vector<8x128xf32>
    %2 = arith.maximumf %0, %1 : vector<8x128xf32>
    %3 = arith.mulf %2, %2 : vector<8x128xf32>
    %cst_1 = arith.constant dense<0.000000e+00> : vector<8xf32>
    %4 = vector.multi_reduction <add>, %3, %cst_1 [1] : vector<8x128xf32> to vector<8xf32>
    %5 = vector.shape_cast %4 : vector<8xf32> to vector<8x1xf32>
    %6 = math.rsqrt %5 : vector<8x1xf32>
    %7 = vector.broadcast %6 : vector<8x1xf32> to vector<8x128xf32>
    %8 = arith.mulf %2, %7 : vector<8x128xf32>
    %9 = arith.truncf %8 : vector<8x128xf32> to vector<8x128xbf16>
    %c0_2 = arith.constant 0 : index
    %c0_3 = arith.constant 0 : index
    %10 = vector.load %arg2[%c0_2, %c0_3] : memref<128x128xbf16, #tpu.memory_space<vmem>>, vector<128x128xbf16>
    %cst_4 = arith.constant dense<0.000000e+00> : vector<8x128xf32>
    %11 = tpu.matmul %9, %10, %cst_4 {dimension_numbers = #tpu.dot_dimension_numbers<[1], [0], [0], [1], [0, 0, 1, 1], [], []>} : vector<8x128xbf16>, vector<128x128xbf16>, vector<8x128xf32> -> vector<8x128xf32>
    %c0_5 = arith.constant 0 : index
    %c0_6 = arith.constant 0 : index
    %12 = vector.load %arg3[%c0_5, %c0_6] : memref<1x128xf32, #tpu.memory_space<vmem>>, vector<1x128xf32>
    %13 = vector.broadcast %12 : vector<1x128xf32> to vector<8x128xf32>
    %14 = arith.addf %11, %13 : vector<8x128xf32>
    %cst_7 = arith.constant 0x7F800000 : f32
    %15 = vector.broadcast %cst_7 : f32 to vector<8x1xf32>
    %cst_8 = arith.constant 0.000000e+00 : f32
    %16 = vector.broadcast %cst_8 : f32 to vector<8x1xf32>
    %cst_9 = arith.constant 8.000000e+00 : f32
    %cst_10 = arith.constant 0xFF800000 : f32
    %c0_i32 = arith.constant 0 : i32
    %cst_11 = arith.constant dense<0xFF800000> : vector<8xf32>
    %17 = vector.multi_reduction <maximumf>, %14, %cst_11 [1] : vector<8x128xf32> to vector<8xf32>
    %18 = vector.shape_cast %17 : vector<8xf32> to vector<8x1xf32>
    %19 = vector.broadcast %18 : vector<8x1xf32> to vector<8x128xf32>
    %20 = arith.cmpf oge, %14, %19 : vector<8x128xf32>
    %21 = arith.extui %20 : vector<8x128xi1> to vector<8x128xi32>
    %22 = arith.sitofp %21 : vector<8x128xi32> to vector<8x128xf32>
    %cst_12 = arith.constant dense<0.000000e+00> : vector<8xf32>
    %23 = vector.multi_reduction <add>, %22, %cst_12 [1] : vector<8x128xf32> to vector<8xf32>
    %24 = vector.shape_cast %23 : vector<8xf32> to vector<8x1xf32>
    %25 = vector.broadcast %cst_9 : f32 to vector<8x1xf32>
    %26 = arith.cmpf olt, %16, %25 : vector<8x1xf32>
    %27 = arith.select %26, %18, %15 : vector<8x1xi1>, vector<8x1xf32>
    %28 = arith.addf %16, %24 : vector<8x1xf32>
    %29 = vector.broadcast %cst_10 : f32 to vector<8x128xf32>
    %30 = arith.select %20, %29, %14 : vector<8x128xi1>, vector<8x128xf32>
    %c1_i32 = arith.constant 1 : i32
    %cst_13 = arith.constant dense<0xFF800000> : vector<8xf32>
    %31 = vector.multi_reduction <maximumf>, %30, %cst_13 [1] : vector<8x128xf32> to vector<8xf32>
    %32 = vector.shape_cast %31 : vector<8xf32> to vector<8x1xf32>
    %33 = vector.broadcast %32 : vector<8x1xf32> to vector<8x128xf32>
    %34 = arith.cmpf oge, %30, %33 : vector<8x128xf32>
    %35 = arith.extui %34 : vector<8x128xi1> to vector<8x128xi32>
    %36 = arith.sitofp %35 : vector<8x128xi32> to vector<8x128xf32>
    %cst_14 = arith.constant dense<0.000000e+00> : vector<8xf32>
    %37 = vector.multi_reduction <add>, %36, %cst_14 [1] : vector<8x128xf32> to vector<8xf32>
    %38 = vector.shape_cast %37 : vector<8xf32> to vector<8x1xf32>
    %39 = vector.broadcast %cst_9 : f32 to vector<8x1xf32>
    %40 = arith.cmpf olt, %28, %39 : vector<8x1xf32>
    %41 = arith.select %40, %32, %27 : vector<8x1xi1>, vector<8x1xf32>
    %42 = arith.addf %28, %38 : vector<8x1xf32>
    %43 = vector.broadcast %cst_10 : f32 to vector<8x128xf32>
    %44 = arith.select %34, %43, %30 : vector<8x128xi1>, vector<8x128xf32>
    %c2_i32 = arith.constant 2 : i32
    %cst_15 = arith.constant dense<0xFF800000> : vector<8xf32>
    %45 = vector.multi_reduction <maximumf>, %44, %cst_15 [1] : vector<8x128xf32> to vector<8xf32>
    %46 = vector.shape_cast %45 : vector<8xf32> to vector<8x1xf32>
    %47 = vector.broadcast %46 : vector<8x1xf32> to vector<8x128xf32>
    %48 = arith.cmpf oge, %44, %47 : vector<8x128xf32>
    %49 = arith.extui %48 : vector<8x128xi1> to vector<8x128xi32>
    %50 = arith.sitofp %49 : vector<8x128xi32> to vector<8x128xf32>
    %cst_16 = arith.constant dense<0.000000e+00> : vector<8xf32>
    %51 = vector.multi_reduction <add>, %50, %cst_16 [1] : vector<8x128xf32> to vector<8xf32>
    %52 = vector.shape_cast %51 : vector<8xf32> to vector<8x1xf32>
    %53 = vector.broadcast %cst_9 : f32 to vector<8x1xf32>
    %54 = arith.cmpf olt, %42, %53 : vector<8x1xf32>
    %55 = arith.select %54, %46, %41 : vector<8x1xi1>, vector<8x1xf32>
    %56 = arith.addf %42, %52 : vector<8x1xf32>
    %57 = vector.broadcast %cst_10 : f32 to vector<8x128xf32>
    %58 = arith.select %48, %57, %44 : vector<8x128xi1>, vector<8x128xf32>
    %c3_i32 = arith.constant 3 : i32
    %cst_17 = arith.constant dense<0xFF800000> : vector<8xf32>
    %59 = vector.multi_reduction <maximumf>, %58, %cst_17 [1] : vector<8x128xf32> to vector<8xf32>
    %60 = vector.shape_cast %59 : vector<8xf32> to vector<8x1xf32>
    %61 = vector.broadcast %60 : vector<8x1xf32> to vector<8x128xf32>
    %62 = arith.cmpf oge, %58, %61 : vector<8x128xf32>
    %63 = arith.extui %62 : vector<8x128xi1> to vector<8x128xi32>
    %64 = arith.sitofp %63 : vector<8x128xi32> to vector<8x128xf32>
    %cst_18 = arith.constant dense<0.000000e+00> : vector<8xf32>
    %65 = vector.multi_reduction <add>, %64, %cst_18 [1] : vector<8x128xf32> to vector<8xf32>
    %66 = vector.shape_cast %65 : vector<8xf32> to vector<8x1xf32>
    %67 = vector.broadcast %cst_9 : f32 to vector<8x1xf32>
    %68 = arith.cmpf olt, %56, %67 : vector<8x1xf32>
    %69 = arith.select %68, %60, %55 : vector<8x1xi1>, vector<8x1xf32>
    %70 = arith.addf %56, %66 : vector<8x1xf32>
    %71 = vector.broadcast %cst_10 : f32 to vector<8x128xf32>
    %72 = arith.select %62, %71, %58 : vector<8x128xi1>, vector<8x128xf32>
    %c4_i32 = arith.constant 4 : i32
    %cst_19 = arith.constant dense<0xFF800000> : vector<8xf32>
    %73 = vector.multi_reduction <maximumf>, %72, %cst_19 [1] : vector<8x128xf32> to vector<8xf32>
    %74 = vector.shape_cast %73 : vector<8xf32> to vector<8x1xf32>
    %75 = vector.broadcast %74 : vector<8x1xf32> to vector<8x128xf32>
    %76 = arith.cmpf oge, %72, %75 : vector<8x128xf32>
    %77 = arith.extui %76 : vector<8x128xi1> to vector<8x128xi32>
    %78 = arith.sitofp %77 : vector<8x128xi32> to vector<8x128xf32>
    %cst_20 = arith.constant dense<0.000000e+00> : vector<8xf32>
    %79 = vector.multi_reduction <add>, %78, %cst_20 [1] : vector<8x128xf32> to vector<8xf32>
    %80 = vector.shape_cast %79 : vector<8xf32> to vector<8x1xf32>
    %81 = vector.broadcast %cst_9 : f32 to vector<8x1xf32>
    %82 = arith.cmpf olt, %70, %81 : vector<8x1xf32>
    %83 = arith.select %82, %74, %69 : vector<8x1xi1>, vector<8x1xf32>
    %84 = arith.addf %70, %80 : vector<8x1xf32>
    %85 = vector.broadcast %cst_10 : f32 to vector<8x128xf32>
    %86 = arith.select %76, %85, %72 : vector<8x128xi1>, vector<8x128xf32>
    %c5_i32 = arith.constant 5 : i32
    %cst_21 = arith.constant dense<0xFF800000> : vector<8xf32>
    %87 = vector.multi_reduction <maximumf>, %86, %cst_21 [1] : vector<8x128xf32> to vector<8xf32>
    %88 = vector.shape_cast %87 : vector<8xf32> to vector<8x1xf32>
    %89 = vector.broadcast %88 : vector<8x1xf32> to vector<8x128xf32>
    %90 = arith.cmpf oge, %86, %89 : vector<8x128xf32>
    %91 = arith.extui %90 : vector<8x128xi1> to vector<8x128xi32>
    %92 = arith.sitofp %91 : vector<8x128xi32> to vector<8x128xf32>
    %cst_22 = arith.constant dense<0.000000e+00> : vector<8xf32>
    %93 = vector.multi_reduction <add>, %92, %cst_22 [1] : vector<8x128xf32> to vector<8xf32>
    %94 = vector.shape_cast %93 : vector<8xf32> to vector<8x1xf32>
    %95 = vector.broadcast %cst_9 : f32 to vector<8x1xf32>
    %96 = arith.cmpf olt, %84, %95 : vector<8x1xf32>
    %97 = arith.select %96, %88, %83 : vector<8x1xi1>, vector<8x1xf32>
    %98 = arith.addf %84, %94 : vector<8x1xf32>
    %99 = vector.broadcast %cst_10 : f32 to vector<8x128xf32>
    %100 = arith.select %90, %99, %86 : vector<8x128xi1>, vector<8x128xf32>
    %c6_i32 = arith.constant 6 : i32
    %cst_23 = arith.constant dense<0xFF800000> : vector<8xf32>
    %101 = vector.multi_reduction <maximumf>, %100, %cst_23 [1] : vector<8x128xf32> to vector<8xf32>
    %102 = vector.shape_cast %101 : vector<8xf32> to vector<8x1xf32>
    %103 = vector.broadcast %102 : vector<8x1xf32> to vector<8x128xf32>
    %104 = arith.cmpf oge, %100, %103 : vector<8x128xf32>
    %105 = arith.extui %104 : vector<8x128xi1> to vector<8x128xi32>
    %106 = arith.sitofp %105 : vector<8x128xi32> to vector<8x128xf32>
    %cst_24 = arith.constant dense<0.000000e+00> : vector<8xf32>
    %107 = vector.multi_reduction <add>, %106, %cst_24 [1] : vector<8x128xf32> to vector<8xf32>
    %108 = vector.shape_cast %107 : vector<8xf32> to vector<8x1xf32>
    %109 = vector.broadcast %cst_9 : f32 to vector<8x1xf32>
    %110 = arith.cmpf olt, %98, %109 : vector<8x1xf32>
    %111 = arith.select %110, %102, %97 : vector<8x1xi1>, vector<8x1xf32>
    %112 = arith.addf %98, %108 : vector<8x1xf32>
    %113 = vector.broadcast %cst_10 : f32 to vector<8x128xf32>
    %114 = arith.select %104, %113, %100 : vector<8x128xi1>, vector<8x128xf32>
    %c7_i32 = arith.constant 7 : i32
    %cst_25 = arith.constant dense<0xFF800000> : vector<8xf32>
    %115 = vector.multi_reduction <maximumf>, %114, %cst_25 [1] : vector<8x128xf32> to vector<8xf32>
    %116 = vector.shape_cast %115 : vector<8xf32> to vector<8x1xf32>
    %117 = vector.broadcast %116 : vector<8x1xf32> to vector<8x128xf32>
    %118 = arith.cmpf oge, %114, %117 : vector<8x128xf32>
    %119 = arith.extui %118 : vector<8x128xi1> to vector<8x128xi32>
    %120 = arith.sitofp %119 : vector<8x128xi32> to vector<8x128xf32>
    %cst_26 = arith.constant dense<0.000000e+00> : vector<8xf32>
    %121 = vector.multi_reduction <add>, %120, %cst_26 [1] : vector<8x128xf32> to vector<8xf32>
    %122 = vector.shape_cast %121 : vector<8xf32> to vector<8x1xf32>
    %123 = vector.broadcast %cst_9 : f32 to vector<8x1xf32>
    %124 = arith.cmpf olt, %112, %123 : vector<8x1xf32>
    %125 = arith.select %124, %116, %111 : vector<8x1xi1>, vector<8x1xf32>
    %126 = arith.addf %112, %122 : vector<8x1xf32>
    %127 = vector.broadcast %cst_10 : f32 to vector<8x128xf32>
    %128 = arith.select %118, %127, %114 : vector<8x128xi1>, vector<8x128xf32>
    %129 = vector.broadcast %125 : vector<8x1xf32> to vector<8x128xf32>
    %130 = arith.cmpf oge, %14, %129 : vector<8x128xf32>
    %cst_27 = arith.constant 0.000000e+00 : f32
    %131 = vector.broadcast %cst_27 : f32 to vector<8x128xf32>
    %132 = arith.select %130, %14, %131 : vector<8x128xi1>, vector<8x128xf32>
    %133 = arith.truncf %132 : vector<8x128xf32> to vector<8x128xbf16>
    %c0_28 = arith.constant 0 : index
    %c0_29 = arith.constant 0 : index
    %134 = vector.load %arg4[%c0_28, %c0_29] : memref<128x128xbf16, #tpu.memory_space<vmem>>, vector<128x128xbf16>
    %cst_30 = arith.constant dense<0.000000e+00> : vector<8x128xf32>
    %135 = tpu.matmul %133, %134, %cst_30 {dimension_numbers = #tpu.dot_dimension_numbers<[1], [0], [0], [1], [0, 0, 1, 1], [], []>} : vector<8x128xbf16>, vector<128x128xbf16>, vector<8x128xf32> -> vector<8x128xf32>
    %c0_31 = arith.constant 0 : index
    %c0_32 = arith.constant 0 : index
    %136 = vector.load %arg5[%c0_31, %c0_32] : memref<1x128xf32, #tpu.memory_space<vmem>>, vector<1x128xf32>
    %137 = vector.broadcast %136 : vector<1x128xf32> to vector<8x128xf32>
    %138 = arith.addf %135, %137 : vector<8x128xf32>
    %c0_33 = arith.constant 0 : index
    %c0_34 = arith.constant 0 : index
    %139 = vector.load %arg6[%c0_33, %c0_34] : memref<8x128xf32, #tpu.memory_space<vmem>>, vector<8x128xf32>
    tpu.vector_store %arg6[%c0_33, %c0_34], %138 {strides = array<i32>} : memref<8x128xf32, #tpu.memory_space<vmem>>, vector<8x128xf32>,
    return
  }
  func.func @transform_0(%arg0: i32) -> (i32, i32) {
    %c0_i32 = arith.constant 0 : i32
    %c0_i32_0 = arith.constant 0 : i32
    return %arg0, %c0_i32 : i32, i32
  }
  func.func @transform_1(%arg0: i32) -> (i32, i32) {
    %c0_i32 = arith.constant 0 : i32
    %c0_i32_0 = arith.constant 0 : i32
    %c0_i32_1 = arith.constant 0 : i32
    return %c0_i32, %c0_i32_0 : i32, i32
  }
  func.func @transform_2(%arg0: i32) -> (i32, i32) {
    %c0_i32 = arith.constant 0 : i32
    %c0_i32_0 = arith.constant 0 : i32
    %c0_i32_1 = arith.constant 0 : i32
    return %c0_i32, %c0_i32_0 : i32, i32
  }
  func.func @transform_3(%arg0: i32) -> (i32, i32) {
    %c0_i32 = arith.constant 0 : i32
    %c0_i32_0 = arith.constant 0 : i32
    %c0_i32_1 = arith.constant 0 : i32
    return %c0_i32, %c0_i32_0 : i32, i32
  }
  func.func @transform_4(%arg0: i32) -> (i32, i32) {
    %c0_i32 = arith.constant 0 : i32
    %c0_i32_0 = arith.constant 0 : i32
    %c0_i32_1 = arith.constant 0 : i32
    return %c0_i32, %c0_i32_0 : i32, i32
  }
  func.func @transform_5(%arg0: i32) -> (i32, i32) {
    %c0_i32 = arith.constant 0 : i32
    %c0_i32_0 = arith.constant 0 : i32
    return %arg0, %c0_i32 : i32, i32
  }
}

</mosaic_0001>

<bundles_post_ra>
// kernel: tpu_custom_call.1
= control target key start
LH: loop header
LB: loop body
LE: loop exit
PB: predicated region body
PF: predicated region fallthrough
CT: control target
= control target key end

     0   :  { %10 = vsyncpa [#allocation3], 0  ;;  %s644_s0 = inlined_call_operand.hbm [shape: f32[8,128], index: 0, kind: input, shape index: {}]   ;;  %s645_s1 = inlined_call_operand.hbm [shape: bf16[128,128], index: 1, kind: input, shape index: {}]   ;;  %s646_s2 = inlined_call_operand.vmem [shape: f32[1,128], index: 2, kind: input, shape index: {}]   ;;  %s647_s3 = inlined_call_operand.hbm [shape: bf16[128,128], index: 3, kind: input, shape index: {}]   ;;  %s648_s4 = inlined_call_operand.vmem [shape: f32[1,128], index: 4, kind: input, shape index: {}]   ;;  %s649_s5 = inlined_call_operand.hbm [shape: f32[8,128], index: 5, kind: output, shape index: {}]  }
   0x1   :  { %11 = vsyncpa [#allocation6], 0  ;;  %s28_s20 = sshll.u32 %s645_s1, 4  ;;  %s29_s20 = int_to_ptr.hbm [resolvable:$true] %s28_s20 }
   0x2   :  { %12 = vsyncpa [#allocation4], 0  ;;  %s551_s21 = smov [#allocation5]   ;;  %s18_s25 = sshll.u32 %s644_s0, 4  ;;  %s19_s25 = int_to_ptr.hbm [resolvable:$true] %s18_s25 }
   0x3   :  { %s30_s22 = sshll.u32 %s551_s21, 4  ;;  %s552_s26 = smov 64   ;;  %s31_s22 = int_to_ptr.vmem [resolvable:$true] %s30_s22 }
   0x4   :  { %s553_s27 = smov 4   ;;  %s554_s28 = smov [#allocation2]  }
   0x5   :  { %36 = dma.hbm_to_vmem [thread:$0]  %s29_s20, 1024, %s31_s22, [#allocation6], %s552_s26, %s552_s26, %s553_s27  }
   0x6   :  { %s20_s29 = sshll.u32 %s554_s28, 4  ;;  %s43_s7 = sshll.u32 %s647_s3, 4  ;;  %s21_s29 = int_to_ptr.vmem [resolvable:$true] %s20_s29  ;;  %s44_s7 = int_to_ptr.hbm [resolvable:$true] %s43_s7 }
   0x7   :  { %23 = dma.hbm_to_vmem [thread:$0]  %s19_s25, 128, %s21_s29, [#allocation3]  }
   0x8   :  { %s555_s1 = smov [#allocation7]  }
   0x9   :  { %s45_s8 = sshll.u32 %s555_s1, 4  ;;  %s46_s8 = int_to_ptr.vmem [resolvable:$true] %s45_s8 }
   0xa   :  { %51 = dma.hbm_to_vmem [thread:$0]  %s44_s7, 1024, %s46_s8, [#allocation6], %s552_s26, %s552_s26, %s553_s27  }
   0xb   :  { %545 = dma.done.wait [#allocation3], 128  }
   0xc   :  { %546 = vsyncadd [#allocation3], 4294967168 }
   0xd   :  { %547 = dma.done.wait [#allocation6], 2048  }
   0xe   :  { %548 = vsyncadd [#allocation6], 4294965248  ;;  %v66_v0 = vld [vmem:[#allocation2] sm:$0xff]  ;;  %v428_v3 = vld [vmem:[#allocation5 + $0x30] sm:$0xff]  ;;  %v556_v33 = vmov 0.0   ;;  %s557_s10 = smov [#allocation8]  }
   0xf   :  { %v429_v1 = vld [vmem:[#allocation5 + $0x38] sm:$0xff]  ;;  %v67_v2 = vmax.f32 %v66_v0, 0.0  ;;  %v427_v5 = vld [vmem:[#allocation5 + $0x28] sm:$0xff]  ;;  %v426_v6 = vld [vmem:[#allocation5 + $0x20] sm:$0xff]  ;;  %s335_s11 = sshll.u32 %s557_s10, 4  ;;  %s337_s14 = sshll.u32 %s649_s5, 4  ;;  %s336_s11 = int_to_ptr.vmem [resolvable:$true] %s335_s11  ;;  %s338_s14 = int_to_ptr.hbm [resolvable:$true] %s337_s14 }
  0x10   :  { %151 = vmatpush.bf16.msra.mxu0 %v429_v1  ;;  %v425_v7 = vld [vmem:[#allocation5 + $0x18] sm:$0xff]  ;;  %v424_v8 = vld [vmem:[#allocation5 + $0x10] sm:$0xff]  ;;  %v423_v9 = vld [vmem:[#allocation5 + $0x8] sm:$0xff] }
  0x11   :  { %v68_v4 = vmul.f32 %v67_v2, %v67_v2  ;;  %v422_v10 = vld [vmem:[#allocation5] sm:$0xff]  ;;  %v445_v21 = vld [vmem:[%s646_s2] ss:$0 sm:$0xff]  ;;  %v436_v45 = vld [vmem:[#allocation7 + $0x30] sm:$0xff] }
  0x12   :  { %v437_v44 = vld [vmem:[#allocation7 + $0x38] sm:$0xff]  ;;  %v435_v46 = vld [vmem:[#allocation7 + $0x28] sm:$0xff]  ;;  %v434_v47 = vld [vmem:[#allocation7 + $0x20] sm:$0xff] }
  0x13   :  { %69 = vadd.xlane.f32.xlu0 %v68_v4  ;;  %316 = vmatpush.bf16.msra.mxu1 %v437_v44  ;;  %v433_v51 = vld [vmem:[#allocation7 + $0x18] sm:$0xff]  ;;  %v432_v52 = vld [vmem:[#allocation7 + $0x10] sm:$0xff]  ;;  %v431_v53 = vld [vmem:[#allocation7 + $0x8] sm:$0xff] }
  0x14   :  { %152 = vmatpush.bf16.msra.mxu0 %v428_v3  ;;  %v430_v54 = vld [vmem:[#allocation7] sm:$0xff] }
  0x17   :  { %317 = vmatpush.bf16.msra.mxu1 %v436_v45 }
  0x18   :  { %153 = vmatpush.bf16.msra.mxu0 %v427_v5 }
  0x1b   :  { %318 = vmatpush.bf16.msra.mxu1 %v435_v46 }
  0x1c   :  { %154 = vmatpush.bf16.msra.mxu0 %v426_v6 }
  0x1f   :  { %319 = vmatpush.bf16.msra.mxu1 %v434_v47 }
  0x20   :  { %155 = vmatpush.bf16.msra.mxu0 %v425_v7 }
  0x23   :  { %320 = vmatpush.bf16.msra.mxu1 %v433_v51 }
  0x24   :  { %156 = vmatpush.bf16.msra.mxu0 %v424_v8 }
  0x27   :  { %321 = vmatpush.bf16.msra.mxu1 %v432_v52 }
  0x28   :  { %157 = vmatpush.bf16.msra.mxu0 %v423_v9 }
  0x2b   :  { %322 = vmatpush.bf16.msra.mxu1 %v431_v53 }
  0x2c   :  { %158 = vmatpush.bf16.msra.mxu0 %v422_v10 }
  0x2f   :  { %323 = vmatpush.bf16.msra.mxu1 %v430_v54 }
  0x86   :  { %v70_v11 = vpop.xlane.xlu0 %69 }
  0x87   :  { %447 = vrsqrt.f32 %v70_v11  ;;  %vm77_vm1 = vweird.f32 %v70_v11 }
  0x8d   :  { %v448_v12 = vpop.eup %447 }
  0x8e   :  { %v72_v13 = vmul.f32 %v448_v12, %v70_v11  ;;  %vm78_vm0 = vweird.f32 %v448_v12 }
  0x8f   :  { %vm79_vm2 = vmor %vm77_vm1, %vm78_vm0 }
  0x90   :  { %v73_v14 = vmul.f32 %v448_v12, %v72_v13  ;;  %v446_v13 = vld [vmem:[%s648_s4] ss:$0 sm:$0xff] }
  0x92   :  { %v74_v15 = vmul.f32 0.5, %v73_v14 }
  0x94   :  { %v75_v16 = vsub.f32 1.5, %v74_v15 }
  0x96   :  { %v76_v17 = vmul.f32 %v448_v12, %v75_v16 }
  0x98   :  { %v80_v18 = vsel %vm79_vm2, %v448_v12, %v76_v17 }
  0x99   :  { %v81_v19 = vmul.f32 %v80_v18, %v67_v2 }
  0x9b   :  { %v82_v20 = vpack.c.bf16 %v81_v19, %v81_v19 }
  0x9d   :  { %159 = vmatmul.bf16.vlgmr.msra.gmra.mxu0 %v82_v20 }
 0x11a   :  { %v160_v22 = vpop.f32.mrf.mxu0 }
 0x11b   :  { %v600_v23 = vadd.f32 %v445_v21, %v160_v22 }
 0x11d   :  { %164 = vmax.xlane.f32.xlu0 %v600_v23  ;;  %v420_v12 = vpack.c.bf16 %v600_v23, %v600_v23 }
 0x122   :  { %v162_v24 = vpop.f32.mrf.mxu0 }
 0x190   :  { %v603_v25 = vpop.xlane.xlu0 %164 }
 0x191   :  { %vm166_vm3 = vcmp.ge.f32.partialorder %v600_v23, %v603_v25 }
 0x192   :  { %v174_v26 = vsel %vm166_vm3, -inf, %v600_v23  ;;  %v380_v34 = vsel %vm166_vm3, 1.0, %v556_v33 }
 0x193   :  { %175 = vmax.xlane.f32.xlu1 %v174_v26 }
 0x206   :  { %v611_v27 = vpop.xlane.xlu1 %175 }
 0x207   :  { %vm177_vm4 = vcmp.ge.f32.partialorder %v174_v26, %v611_v27 }
 0x208   :  { %v185_v28 = vsel %vm177_vm4, -inf, %v174_v26  ;;  %v381_v38 = vsel %vm177_vm4, 1.0, %v556_v33 }
 0x209   :  { %186 = vmax.xlane.f32.xlu1 %v185_v28 }
 0x27c   :  { %v616_v29 = vpop.xlane.xlu1 %186 }
 0x27d   :  { %vm188_vm5 = vcmp.ge.f32.partialorder %v185_v28, %v616_v29 }
 0x27e   :  { %v196_v30 = vsel %vm188_vm5, -inf, %v185_v28  ;;  %v382_v42 = vsel %vm188_vm5, 1.0, %v556_v33 }
 0x27f   :  { %197 = vmax.xlane.f32.xlu2 %v196_v30 }
 0x2f2   :  { %v621_v31 = vpop.xlane.xlu2 %197 }
 0x2f3   :  { %vm199_vm6 = vcmp.ge.f32.partialorder %v196_v30, %v621_v31 }
 0x2f4   :  { %v207_v32 = vsel %vm199_vm6, -inf, %v196_v30  ;;  %v383_v35 = vsel %vm199_vm6, 1.0, %v556_v33 }
 0x2f5   :  { %208 = vmax.xlane.f32.xlu2 %v207_v32 }
 0x2fd   :  { %169 = vadd.xlane.f32.xlu2 %v380_v34 }
 0x305   :  { %202 = vadd.xlane.f32.xlu2 %v383_v35 }
 0x368   :  { %v209_v36 = vpop.xlane.xlu2 %208 }
 0x369   :  { %vm210_vm7 = vcmp.ge.f32.partialorder %v207_v32, %v209_v36 }
 0x36a   :  { %v218_v37 = vsel %vm210_vm7, -inf, %v207_v32  ;;  %v384_v39 = vsel %vm210_vm7, 1.0, %v556_v33 }
 0x36b   :  { %219 = vmax.xlane.f32.xlu0 %v218_v37 }
 0x370   :  { %v170_v55 = vpop.xlane.xlu2 %169 }
 0x371   :  { %vm182_vm10 = vcmp.lt.f32.partialorder %v170_v55, 8.0 }
 0x372   :  { %v183_v0 = vsel %vm182_vm10, %v611_v27, %v603_v25 }
 0x373   :  { %180 = vadd.xlane.f32.xlu0 %v381_v38 }
 0x378   :  { %v203_v60 = vpop.xlane.xlu2 %202 }
 0x37b   :  { %213 = vadd.xlane.f32.xlu0 %v384_v39 }
 0x3de   :  { %v220_v40 = vpop.xlane.xlu0 %219 }
 0x3df   :  { %vm221_vm8 = vcmp.ge.f32.partialorder %v218_v37, %v220_v40 }
 0x3e0   :  { %v229_v41 = vsel %vm221_vm8, -inf, %v218_v37  ;;  %v385_v43 = vsel %vm221_vm8, 1.0, %v556_v33 }
 0x3e1   :  { %230 = vmax.xlane.f32.xlu1 %v229_v41 }
 0x3e6   :  { %v181_v56 = vpop.xlane.xlu0 %180 }
 0x3e7   :  { %v184_v58 = vadd.f32 %v181_v56, %v170_v55 }
 0x3e9   :  { %191 = vadd.xlane.f32.xlu1 %v382_v42  ;;  %vm193_vm11 = vcmp.lt.f32.partialorder %v184_v58, 8.0 }
 0x3ea   :  { %v194_v2 = vsel %vm193_vm11, %v616_v29, %v183_v0 }
 0x3ee   :  { %v214_v62 = vpop.xlane.xlu0 %213 }
 0x3f1   :  { %224 = vadd.xlane.f32.xlu1 %v385_v43 }
 0x454   :  { %v231_v48 = vpop.xlane.xlu1 %230 }
 0x455   :  { %vm232_vm9 = vcmp.ge.f32.partialorder %v229_v41, %v231_v48 }
 0x456   :  { %v240_v49 = vsel %vm232_vm9, -inf, %v229_v41  ;;  %v386_v50 = vsel %vm232_vm9, 1.0, %v556_v33 }
 0x457   :  { %241 = vmax.xlane.f32.xlu0 %v240_v49  ;;  %235 = vadd.xlane.f32.xlu2 %v386_v50 }
 0x45c   :  { %v192_v57 = vpop.xlane.xlu1 %191 }
 0x45d   :  { %v195_v59 = vadd.f32 %v192_v57, %v184_v58 }
 0x45f   :  { %v206_v61 = vadd.f32 %v203_v60, %v195_v59  ;;  %vm204_vm12 = vcmp.lt.f32.partialorder %v195_v59, 8.0 }
 0x460   :  { %v205_v3 = vsel %vm204_vm12, %v621_v31, %v194_v2 }
 0x461   :  { %v217_v1 = vadd.f32 %v214_v62, %v206_v61  ;;  %vm215_vm13 = vcmp.lt.f32.partialorder %v206_v61, 8.0 }
 0x462   :  { %v216_v5 = vsel %vm215_vm13, %v209_v36, %v205_v3 }
 0x463   :  { %vm226_vm14 = vcmp.lt.f32.partialorder %v217_v1, 8.0 }
 0x464   :  { %v225_v63 = vpop.xlane.xlu1 %224  ;;  %v227_v8 = vsel %vm226_vm14, %v220_v40, %v216_v5 }
 0x465   :  { %v228_v4 = vadd.f32 %v225_v63, %v217_v1 }
 0x467   :  { %vm237_vm15 = vcmp.lt.f32.partialorder %v228_v4, 8.0 }
 0x468   :  { %v238_v9 = vsel %vm237_vm15, %v231_v48, %v227_v8 }
 0x4ca   :  { %v236_v6 = vpop.xlane.xlu2 %235  ;;  %v242_v10 = vpop.xlane.xlu0 %241 }
 0x4cb   :  { %v239_v7 = vadd.f32 %v236_v6, %v228_v4 }
 0x4cd   :  { %vm243_vm0 = vcmp.lt.f32.partialorder %v239_v7, 8.0 }
 0x4ce   :  { %v244_v11 = vsel %vm243_vm0, %v242_v10, %v238_v9 }
 0x4cf   :  { %vm245_vm1 = vcmp.ge.f32.partialorder %v600_v23, %v244_v11 }
 0x4d0   :  { %vm419_vm2 = vmpackc.low %vm245_vm1, %vm245_vm1 }
 0x4d1   :  { %421 = vmatmul.msk.bf16.vlgmr.msra.gmra.mxu1 %vm419_vm2, %v420_v12 }
 0x54e   :  { %v325_v14 = vpop.f32.mrf.mxu1 }
 0x54f   :  { %v326_v15 = vadd.f32 %v446_v13, %v325_v14 }
 0x551   :  { %329 = vst [vmem:[#allocation8] sm:$0xff] %v326_v15 }
 0x552   :  { %340 = dma.vmem_to_hbm [thread:$0]  %s336_s11, 128, %s338_s14, [#allocation4]  }
 0x556   :  { %v327_v16 = vpop.f32.mrf.mxu1 }
 0x557   :  { %549 = dma.done.wait [#allocation4], 128  }
 0x558   :  { %550 = vsyncadd [#allocation4], 4294967168 }
 0x559   :  { %345 = vsyncpa [#allocation3], 1 }
 0x55a   :  { %346 = vsyncpa [#allocation6], 1 }
 0x55b   :  { %347 = vsyncpa [#allocation4], 1 }

</bundles_post_ra>
